<compile_context>
chip_gen: v7x
topology: tpu7x:2x2x1
jax: 0.10.0
libtpu: 0.0.40
codegen_flags: <defaults>
</compile_context>

<pallas_src>
import math

import jax
import jax.numpy as jnp
from jax.experimental import pallas as pl
from jax.experimental.pallas import tpu as pltpu


# ------------------------------- Pallas kernel -------------------------------

def _ffn_kernel(x_ref, w1_ref, b1_ref, w2_ref, b2_ref, o_ref, acc_ref):
    # grid = (row_tiles, ffn_tiles); ffn (reduction for fc2) is the last axis.
    f = pl.program_id(1)

    @pl.when(f == 0)
    def _init():
        acc_ref[...] = jnp.zeros_like(acc_ref)

    # fc1 tile: (TM, E)bf16 @ (E, TF)bf16 -> f32 on the MXU.
    h = jnp.dot(x_ref[...], w1_ref[...], preferred_element_type=jnp.float32)
    # bias + ReLU in f32 on the VPU.
    h = jnp.maximum(h + b1_ref[...], 0.0)
    # TODO(synk): dropout is identity here (inference); the stochastic
    # training-mode dropout of the PyTorch module is not reproduced.

    # fc2 partial over this ffn tile, accumulated in f32.
    acc_ref[...] += jnp.dot(h.astype(w2_ref.dtype), w2_ref[...],
                            preferred_element_type=jnp.float32)

    @pl.when(f == pl.num_programs(1) - 1)
    def _finalize():
        o_ref[...] = (acc_ref[...] + b2_ref[...]).astype(o_ref.dtype)


# --------------------------------- Wrapper ------------------------------------

def position_wise_feed_forward(x, w1, b1, w2, b2, *,
                               block_rows=8, block_ffn=128):
    """y = relu(x @ w1 + b1) @ w2 + b2, dropout = identity.

    x: (..., E); w1: (E, F); b1: (F,); w2: (F, E); b2: (E,).
    block_rows: token rows per grid step (increase to 128/256 at real sizes;
                v6e prefers 256-multiples). Must be a multiple of 8.
    block_ffn:  ffn tile (multiple of 128) or falls back to the whole ffn dim.
    """
    orig_shape = x.shape
    E = orig_shape[-1]
    F = w1.shape[-1]
    N = math.prod(orig_shape[:-1])

    # Flatten leading dims -> (N, E) row tiles (sublane-dense blocks).
    x2 = x.reshape(N, E)

    block_rows = max(8, (block_rows // 8) * 8)
    n_pad = (-N) % block_rows
    if n_pad:
        x2 = jnp.pad(x2, ((0, n_pad), (0, 0)))
    Np = N + n_pad

    # ffn tile must be a multiple of 128 (lane dim) or the full dimension.
    tf = block_ffn if (block_ffn % 128 == 0 and F % block_ffn == 0) else F

    # bf16 operands for the MXU; biases / accumulation stay f32.
    x_bf = x2.astype(jnp.bfloat16)
    w1_bf = w1.astype(jnp.bfloat16)
    w2_bf = w2.astype(jnp.bfloat16)
    b1_f = b1.reshape(1, F).astype(jnp.float32)
    b2_f = b2.reshape(1, E).astype(jnp.float32)

    grid = (Np // block_rows, F // tf)

    cost = pl.CostEstimate(
        flops=4 * Np * E * F,                      # 2*N*E*F per GEMM, two GEMMs
        transcendentals=0,
        bytes_accessed=(x_bf.size * 2 + w1_bf.size * 2 + w2_bf.size * 2
                        + b1_f.size * 4 + b2_f.size * 4 + Np * E * 4),
    )

    out = pl.pallas_call(
        _ffn_kernel,
        out_shape=jax.ShapeDtypeStruct((Np, E), x.dtype),
        grid=grid,
        in_specs=[
            pl.BlockSpec((block_rows, E), lambda i, f: (i, 0)),   # x rows
            pl.BlockSpec((E, tf), lambda i, f: (0, f)),           # w1 ffn tile
            pl.BlockSpec((1, tf), lambda i, f: (0, f)),           # b1 ffn tile
            pl.BlockSpec((tf, E), lambda i, f: (f, 0)),           # w2 ffn tile
            pl.BlockSpec((1, E), lambda i, f: (0, 0)),            # b2
        ],
        out_specs=pl.BlockSpec((block_rows, E), lambda i, f: (i, 0)),
        scratch_shapes=[pltpu.VMEM((block_rows, E), jnp.float32)],
        compiler_params=pltpu.CompilerParams(
            dimension_semantics=("parallel", "arbitrary"),
            vmem_limit_bytes=32 * 1024 * 1024,
        ),
        cost_estimate=cost,
    )(x_bf, w1_bf, b1_f, w2_bf, b2_f)

    if n_pad:
        out = out[:N]
    return out.reshape(orig_shape)


# ----------------------------------- Main --------------------------------------

if __name__ == "__main__":
    B, L = 2, 8
    embed_size, ffn_dim = 32, 256   # ffn_dim=256 -> 2 ffn tiles of 128 (exercises the accumulator path)

    key = jax.random.PRNGKey(0)
    kx, kw1, kb1, kw2, kb2 = jax.random.split(key, 5)

    x = jax.random.normal(kx, (B, L, embed_size), jnp.float32)
    # Weights stored pre-transposed to (in, out): y = x @ W + b.
    w1 = jax.random.normal(kw1, (embed_size, ffn_dim), jnp.float32) * 0.05
    b1 = jax.random.normal(kb1, (ffn_dim,), jnp.float32) * 0.05
    w2 = jax.random.normal(kw2, (ffn_dim, embed_size), jnp.float32) * 0.05
    b2 = jax.random.normal(kb2, (embed_size,), jnp.float32) * 0.05

    out = position_wise_feed_forward(x, w1, b1, w2, b2)
    out = jax.block_until_ready(out)

    # Pure-JAX f32 reference (dropout = identity). bf16 MXU operands change
    # results at ~1e-3 relative level, so compare with a loose tolerance.
    ref = jnp.maximum(x @ w1 + b1, 0.0) @ w2 + b2

    assert out.shape == (B, L, embed_size)
    assert bool(jnp.all(jnp.isfinite(out)))
    assert bool(jnp.allclose(out, ref, atol=2e-2, rtol=2e-2))
    print("KERNEL_OK")
</pallas_src>

<mosaic_0001>
module attributes {stable_mosaic.version = 11 : i64} {
  func.func @_ffn_kernel(%arg0: i32, %arg1: i32, %arg2: memref<8x32xbf16, #tpu.memory_space<vmem>>, %arg3: memref<32x128xbf16, #tpu.memory_space<vmem>>, %arg4: memref<1x128xf32, #tpu.memory_space<vmem>>, %arg5: memref<128x32xbf16, #tpu.memory_space<vmem>>, %arg6: memref<1x32xf32, #tpu.memory_space<vmem>>, %arg7: memref<8x32xf32, #tpu.memory_space<vmem>>, %arg8: memref<8x32xf32, #tpu.memory_space<vmem>>) attributes {dimension_semantics = [#tpu.dimension_semantics<parallel>, #tpu.dimension_semantics<arbitrary>], iteration_bounds = array<i64: 2, 2>, scalar_prefetch = 0 : i64, scratch_operands = 1 : i64, tpu.core_type = #tpu.core_type<tc>, window_params = [{transform_indices = @transform_0, window_bounds = array<i64: 8, 32>}, {transform_indices = @transform_1, window_bounds = array<i64: 32, 128>}, {transform_indices = @transform_2, window_bounds = array<i64: 1, 128>}, {transform_indices = @transform_3, window_bounds = array<i64: 128, 32>}, {pipeline_mode = #tpu.pipeline_mode<synchronous>, transform_indices = @transform_4, window_bounds = array<i64: 1, 32>}, {transform_indices = @transform_5, window_bounds = array<i64: 8, 32>}]} {
    %c0_i32 = arith.constant 0 : i32
    %0 = arith.cmpi eq, %arg1, %c0_i32 : i32
    %1 = arith.extui %0 : i1 to i32
    %c0_i32_0 = arith.constant 0 : i32
    %2 = arith.cmpi ne, %1, %c0_i32_0 : i32
    scf.if %2 {
      %cst_15 = arith.constant 0.000000e+00 : f32
      %20 = vector.broadcast %cst_15 : f32 to vector<8x32xf32>
      %c0_16 = arith.constant 0 : index
      %c0_17 = arith.constant 0 : index
      %21 = vector.load %arg8[%c0_16, %c0_17] : memref<8x32xf32, #tpu.memory_space<vmem>>, vector<8x32xf32>
      tpu.vector_store %arg8[%c0_16, %c0_17], %20 {strides = array<i32>} : memref<8x32xf32, #tpu.memory_space<vmem>>, vector<8x32xf32>,
    } else {
    }
    %c0 = arith.constant 0 : index
    %c0_1 = arith.constant 0 : index
    %3 = vector.load %arg2[%c0, %c0_1] : memref<8x32xbf16, #tpu.memory_space<vmem>>, vector<8x32xbf16>
    %c0_2 = arith.constant 0 : index
    %c0_3 = arith.constant 0 : index
    %4 = vector.load %arg3[%c0_2, %c0_3] : memref<32x128xbf16, #tpu.memory_space<vmem>>, vector<32x128xbf16>
    %cst = arith.constant dense<0.000000e+00> : vector<8x128xf32>
    %5 = tpu.matmul %3, %4, %cst {dimension_numbers = #tpu.dot_dimension_numbers<[1], [0], [0], [1], [0, 0, 1, 1], [], []>} : vector<8x32xbf16>, vector<32x128xbf16>, vector<8x128xf32> -> vector<8x128xf32>
    %c0_4 = arith.constant 0 : index
    %c0_5 = arith.constant 0 : index
    %6 = vector.load %arg4[%c0_4, %c0_5] : memref<1x128xf32, #tpu.memory_space<vmem>>, vector<1x128xf32>
    %7 = vector.broadcast %6 : vector<1x128xf32> to vector<8x128xf32>
    %8 = arith.addf %5, %7 : vector<8x128xf32>
    %cst_6 = arith.constant 0.000000e+00 : f32
    %9 = vector.broadcast %cst_6 : f32 to vector<8x128xf32>
    %10 = arith.maximumf %8, %9 : vector<8x128xf32>
    %c0_7 = arith.constant 0 : index
    %c0_8 = arith.constant 0 : index
    %11 = vector.load %arg8[%c0_7, %c0_8] : memref<8x32xf32, #tpu.memory_space<vmem>>, vector<8x32xf32>
    %12 = arith.truncf %10 : vector<8x128xf32> to vector<8x128xbf16>
    %c0_9 = arith.constant 0 : index
    %c0_10 = arith.constant 0 : index
    %13 = vector.load %arg5[%c0_9, %c0_10] : memref<128x32xbf16, #tpu.memory_space<vmem>>, vector<128x32xbf16>
    %cst_11 = arith.constant dense<0.000000e+00> : vector<8x32xf32>
    %14 = tpu.matmul %12, %13, %cst_11 {dimension_numbers = #tpu.dot_dimension_numbers<[1], [0], [0], [1], [0, 0, 1, 1], [], []>} : vector<8x128xbf16>, vector<128x32xbf16>, vector<8x32xf32> -> vector<8x32xf32>
    %15 = arith.addf %11, %14 : vector<8x32xf32>
    %c0_12 = arith.constant 0 : index
    %c0_13 = arith.constant 0 : index
    %16 = vector.load %arg8[%c0_12, %c0_13] : memref<8x32xf32, #tpu.memory_space<vmem>>, vector<8x32xf32>
    tpu.vector_store %arg8[%c0_12, %c0_13], %15 {strides = array<i32>} : memref<8x32xf32, #tpu.memory_space<vmem>>, vector<8x32xf32>,
    %c1_i32 = arith.constant 1 : i32
    %17 = arith.cmpi eq, %arg1, %c1_i32 : i32
    %18 = arith.extui %17 : i1 to i32
    %c0_i32_14 = arith.constant 0 : i32
    %19 = arith.cmpi ne, %18, %c0_i32_14 : i32
    scf.if %19 {
      %c0_15 = arith.constant 0 : index
      %c0_16 = arith.constant 0 : index
      %20 = vector.load %arg8[%c0_15, %c0_16] : memref<8x32xf32, #tpu.memory_space<vmem>>, vector<8x32xf32>
      %c0_17 = arith.constant 0 : index
      %c0_18 = arith.constant 0 : index
      %21 = vector.load %arg6[%c0_17, %c0_18] : memref<1x32xf32, #tpu.memory_space<vmem>>, vector<1x32xf32>
      %22 = vector.broadcast %21 : vector<1x32xf32> to vector<8x32xf32>
      %23 = arith.addf %20, %22 : vector<8x32xf32>
      %c0_19 = arith.constant 0 : index
      %c0_20 = arith.constant 0 : index
      %24 = vector.load %arg7[%c0_19, %c0_20] : memref<8x32xf32, #tpu.memory_space<vmem>>, vector<8x32xf32>
      tpu.vector_store %arg7[%c0_19, %c0_20], %23 {strides = array<i32>} : memref<8x32xf32, #tpu.memory_space<vmem>>, vector<8x32xf32>,
    } else {
    }
    return
  }
  func.func @transform_0(%arg0: i32, %arg1: i32) -> (i32, i32) {
    %c0_i32 = arith.constant 0 : i32
    %c0_i32_0 = arith.constant 0 : i32
    return %arg0, %c0_i32 : i32, i32
  }
  func.func @transform_1(%arg0: i32, %arg1: i32) -> (i32, i32) {
    %c0_i32 = arith.constant 0 : i32
    %c0_i32_0 = arith.constant 0 : i32
    return %c0_i32, %arg1 : i32, i32
  }
  func.func @transform_2(%arg0: i32, %arg1: i32) -> (i32, i32) {
    %c0_i32 = arith.constant 0 : i32
    %c0_i32_0 = arith.constant 0 : i32
    return %c0_i32, %arg1 : i32, i32
  }
  func.func @transform_3(%arg0: i32, %arg1: i32) -> (i32, i32) {
    %c0_i32 = arith.constant 0 : i32
    %c0_i32_0 = arith.constant 0 : i32
    return %arg1, %c0_i32 : i32, i32
  }
  func.func @transform_4(%arg0: i32, %arg1: i32) -> (i32, i32) {
    %c0_i32 = arith.constant 0 : i32
    %c0_i32_0 = arith.constant 0 : i32
    %c0_i32_1 = arith.constant 0 : i32
    return %c0_i32, %c0_i32_0 : i32, i32
  }
  func.func @transform_5(%arg0: i32, %arg1: i32) -> (i32, i32) {
    %c0_i32 = arith.constant 0 : i32
    %c0_i32_0 = arith.constant 0 : i32
    return %arg0, %c0_i32 : i32, i32
  }
}

</mosaic_0001>

<bundles_post_ra>
// kernel: tpu_custom_call.1
= control target key start
LH: loop header
LB: loop body
LE: loop exit
PB: predicated region body
PF: predicated region fallthrough
CT: control target
= control target key end

     0   :  { %s1189_s0 = inlined_call_operand.vmem [shape: bf16[16,32], index: 0, kind: input, shape index: {}]   ;;  %s1190_s1 = inlined_call_operand.vmem [shape: bf16[32,256], index: 1, kind: input, shape index: {}]   ;;  %s1191_s2 = inlined_call_operand.vmem [shape: f32[1,256], index: 2, kind: input, shape index: {}]   ;;  %s1192_s3 = inlined_call_operand.vmem [shape: bf16[256,32], index: 3, kind: input, shape index: {}]   ;;  %s1193_s4 = inlined_call_operand.vmem [shape: f32[1,32], index: 4, kind: input, shape index: {}]   ;;  %s1194_s5 = inlined_call_operand.hbm [shape: f32[16,32], index: 5, kind: output, shape index: {}]  }
   0x1   :  { %1201 = sst [smem:[#allocation14_spill]] %s1190_s1 }
   0x2   :  { %10 = vsyncpa [#allocation5], 0 }
   0x3   :  { %12 = vsyncpa [#allocation5 + $0x1], 0  ;;  %s979_s18 = smov 0   ;;  %s981_s19 = smov 0  }
   0x4   :  { %s983_s20 = smov 0   ;;  %s985_s21 = smov 0  }
   0x5   :  { %s987_s22 = smov 0   ;;  %s989_s23 = smov 0  }
   0x6   :  { %s991_s24 = smov 0   ;;  %s993_s25 = smov 0  }
   0x7   :  { %s995_s26 = smov 0   ;;  %s997_s27 = smov 0  }
   0x8 LB: > { %1202 = sst [smem:[#allocation7_spill]] %s923_s22  ;;  %s662_s28 = sadd.s32 4294967295, %s943_s27   ;;  %s943_s27 = sphi %s997_s27, %s18_s27   ;;  %s939_s26 = sphi %s995_s26, %s1224_s26   ;;  %s935_s25 = sphi %s993_s25, %s1219_s25   ;;  %s931_s24 = sphi %s991_s24, %s1218_s24   ;;  %s927_s23 = sphi %s989_s23, %s1217_s23   ;;  %s923_s22 = sphi %s987_s22, %s1216_s22   ;;  %s919_s21 = sphi %s985_s21, %s1215_s21   ;;  %s915_s20 = sphi %s983_s20, %s1223_s20   ;;  %s911_s19 = sphi %s981_s19, %s1222_s19   ;;  %s907_s18 = sphi %s979_s18, %s1221_s18  }
   0x9   : > { %1203 = sst [smem:[#allocation8_spill]] %s935_s25  ;;  %s663_s29 = sadd.s32 4294967294, %s943_s27  }
   0xa   : > { %1204 = sst [smem:[#allocation9_spill]] %s939_s26  ;;  %s27_s30 = sadd.s32 1, %s935_s25 }
   0xb   : > { %s30_s6 = sadd.s32 1, %s939_s26  ;;  %p28_p0 = scmp.ge.s32.totalorder %s27_s30, 2 }
   0xc   : > { %s63_s7 = sadd.s32 1, %s923_s22  ;;  %p70_p1 = scmp.ne.s32.totalorder %s923_s22, %s919_s21 }
   0xd   : > { %p71_p2 = scmp.eq.s32.totalorder %s943_s27, 0  ;;  %s1226_s30 = smov (%p28_p0, %s27_s30), 0 }
   0xe   : > { %1205 = sst [smem:[#allocation10_spill]] %s1226_s30  ;;  %s1228_s6 = smov (!%p28_p0, %s30_s6), %s939_s26 }
   0xf   : > { %s60_s8 = ssub.s32 %s935_s25, %s1226_s30  ;;  %p1042_p3 = por %p71_p2, %p70_p1 }
  0x10   : > { %p32_p4 = scmp.ge.s32.totalorder %s1228_s6, 2  ;;  %p61_p5 = scmp.eq.s32.totalorder %s60_s8, 0 }
  0x11   : > { %s162_s10 = sadd.s32 1, %s915_s20  ;;  %p172_p6 = scmp.ne.s32.totalorder %s915_s20, %s911_s19 }
  0x12   : > { %s1230_s6 = smov (%p32_p4, %s1228_s6), 0  ;;  %p173_p7 = scmp.eq.s32.totalorder %s662_s28, 3 }
  0x13   : > { %1207 = sst [smem:[#allocation11_spill]] %s1230_s6  ;;  %s159_s12 = ssub.s32 %s939_s26, %s1230_s6 }
  0x14   : > { %s1052_s11 = scalar_select %p61_p5, %s923_s22, %s63_s7  }
  0x15   : > { %p160_p8 = scmp.eq.s32.totalorder %s159_s12, 0  ;;  %p178_p9 = scmp.ne.s32.totalorder %s911_s19, %s907_s18 }
  0x16   : > { %1208 = sst [smem:[#allocation12_spill]] %s1052_s11  ;;  %p1058_p10 = por %p173_p7, %p172_p6 }
  0x17   : > { %p179_p11 = scmp.eq.s32.totalorder %s663_s29, 3  ;;  %p665_p13 = scmp.ge.s32.totalorder %s943_s27, 4 }
  0x18   : > { %s1063_s14 = scalar_select %p160_p8, %s915_s20, %s162_s10  }
  0x19   : > { %p1065_p12 = por %p179_p11, %p178_p9  ;;  %198 = sbr.rel (%p665_p13) target bundleno = 44 (0x2c), region = 20 }
  0x1a   : > { %1210 = sst [smem:[#allocation13_spill]] %s1063_s14 }
  0x20   : > { %208 = sbr.rel (!%p1042_p3) target bundleno = 44 (0x2c), region = 28  ;;  %s210_s16 = sand.u32 (%p1042_p3), 1, %s923_s22  }
  0x21   : > { %s667_s17 = sshll.u32 (%p1042_p3), %s935_s25, 2  ;;  %s666_s28 = sshll.u32 (%p1042_p3), %s210_s16, 4 }
  0x22   : > { %s1212_s1 = sld [smem:[#allocation14_spill]] (%p1042_p3)  ;;  %s212_s10 = scalar_lea.vmem (%p1042_p3), [#allocation3], %s666_s28 }
  0x28   : > { %s214_s29 = scalar_lea.vmem %s1212_s1, %s667_s17 }
  0x29   : > { %v230_v0 = vld [vmem:[%s214_s29] sm:$0xf]  ;;  %v232_v1 = vld [vmem:[%s214_s29 + $0x8] sm:$0xf]  ;;  %v234_v2 = vld [vmem:[%s214_s29 + $0x10] sm:$0xf] }
  0x2a   : > { %231 = vst [vmem:[%s212_s10] sm:$0xf] %v230_v0  ;;  %233 = vst [vmem:[%s212_s10 + $0x4] sm:$0xf] %v232_v1  ;;  %v236_v3 = vld [vmem:[%s214_s29 + $0x18] sm:$0xf] }
  0x2b   : > { %235 = vst [vmem:[%s212_s10 + $0x8] sm:$0xf] %v234_v2  ;;  %237 = vst [vmem:[%s212_s10 + $0xc] sm:$0xf] %v236_v3 }
  0x2c PF: > { %p668_p0 = scmp.ge.s32.totalorder %s943_s27, 1  ;;  %p282_p1 = scmp.lt.s32.totalorder %s943_s27, 5 }
  0x2e   : > { %p283_p2 = pnand %p668_p0, %p282_p1 }
  0x2f   : > { %s289_s9 = sand.u32 (!%p283_p2), 1, %s919_s21   ;;  %s1197_s12 = sand.u32 (!%p283_p2), 1, %s911_s19  }
  0x30   : > { %286 = sbr.rel (%p283_p2) target bundleno = 543 (0x21f), region = 77  ;;  %s669_s16 = sshll.u32 (!%p283_p2), %s289_s9, 4 }
  0x31   : > { %s1083_s17 = sshll.u32 (!%p283_p2), %s1197_s12, 3  ;;  %p328_p3 = scmp.lt.s32.totalorder (!%p283_p2), %s931_s24, 1 }
  0x32   : > { %p332_p4 = scmp.lt.s32.totalorder (!%p283_p2), %s927_s23, 1  ;;  %s672_s28 = sshll.u32 (!%p283_p2), %s927_s23, 4 }
  0x33   : > { %p336_p5 = scmp.lt.s32.totalorder (!%p283_p2), %s672_s28, 31  ;;  %s291_s22 = scalar_lea.vmem (!%p283_p2), [#allocation3], %s669_s16 }
  0x34   : > { %s327_s14 = scalar_lea.vmem (!%p283_p2), [#allocation4], %s1083_s17  ;;  %p674_p6 = scmp.ne.s32.totalorder (!%p283_p2), %s927_s23, 0 }
  0x37   : > { %s329_s7 = scalar_select %p328_p3, %s931_s24, 1 }
  0x38   : > { %s1090_s8 = scalar_select %p332_p4, %s927_s23, 1 }
  0x39   : > { %s671_s29 = sshll.u32 %s329_s7, 2  ;;  %s1232_s28 = smov (!%p336_p5, %s672_s28), 31  ;;  %vm346_vm0 = vcmask (!%p674_p6), 261120   ;;  %v945_v4 = vmov (!%p674_p6), 0.0  }
  0x3a   : > { %s331_s6 = scalar_lea.vmem %s1189_s0, %s671_s29  ;;  %s334_s9 = scalar_lea.vmem %s1191_s2, %s1090_s8  ;;  %347 = vst.msk [vmem:[#allocation2] sm:$0xff] (!%p674_p6), %vm346_vm0, %v945_v4 }
  0x3b   : > { %s673_s12 = sshll.u32 %s1232_s28, 2  ;;  %345 = sbr.rel (%p674_p6) target bundleno = 66 (0x42), region = 85 }
  0x3c   : > { %s1102_s11 = scalar_lea.vmem %s1192_s3, %s673_s12 }
  0x42 PF: > { %v823_v5 = vld [vmem:[%s291_s22] sm:$0xff]   ;;  %v946_v6 = vmov 0.0   ;;  %v824_v7 = vld [vmem:[%s291_s22 + $0x8] sm:$0xff]   ;;  %vm947_vm1 = vmmov 0   ;;  %vm372_vm2 = vcmask 261120   ;;  %p687_p7 = scmp.ne.s32.totalorder %s927_s23, 1 }
  0x43   : > { %705 = vmatprep.subr.bf16.mxu0 %v946_v6  ;;  %713 = vmatprep.subr.bf16.mxu1 %v946_v6  ;;  %v825_v8 = vld [vmem:[%s1102_s11] sm:$0xff]   ;;  %v826_v9 = vld [vmem:[%s1102_s11 + $0x8] sm:$0xff]   ;;  %v827_v11 = vld [vmem:[%s1102_s11 + $0x10] sm:$0xff]  }
  0x44   : > { %706 = vmatpush3.bf16.msra.mxu0 %v823_v5  ;;  %709 = vmatprep.mubr.msk.bf16.mxu0 %vm947_vm1, %v946_v6  ;;  %v348_v10 = vld [vmem:[%s331_s6] sm:$0xf]  ;;  %v828_v12 = vld [vmem:[%s1102_s11 + $0x18] sm:$0xff]   ;;  %v830_v14 = vld [vmem:[%s1102_s11 + $0x28] sm:$0xff]  }
  0x45   : > { %707 = vmatprep.subr.bf16.mxu0 %v946_v6  ;;  %729 = vmatprep.mubr.msk.bf16.mxu1 %vm947_vm1, %v946_v6  ;;  %v829_v13 = vld [vmem:[%s1102_s11 + $0x20] sm:$0xff]   ;;  %v831_v15 = vld [vmem:[%s1102_s11 + $0x30] sm:$0xff]   ;;  %v832_v16 = vld [vmem:[%s1102_s11 + $0x38] sm:$0xff]  }
  0x46   : > { %714 = vmatpush3.bf16.msra.mxu1 %v825_v8  ;;  %v675_v17 = vld [vmem:[%s334_s9] ss:$0 sm:$0xff] }
  0x47   : > { %715 = vmatprep.subr.bf16.mxu1 %v946_v6  ;;  %v417_v25 = vld [vmem:[#allocation2] sm:$0xff] }
  0x48   : > { %708 = vmatpush3.bf16.msra.mxu0 %v824_v7  ;;  %v688_v32 = vld [vmem:[%s1193_s4] ss:$0 sm:$0xff] (!%p687_p7) }
  0x4a   : > { %716 = vmatpush3.bf16.msra.mxu1 %v826_v9 }
  0x4b   : > { %710 = vmatmul.mubr.msk.bf16.vlgmr.msra.gmra.mrb[0].mxu0 %vm372_vm2, %v348_v10  ;;  %717 = vmatprep.subr.bf16.mxu1 %v946_v6 }
  0x4e   : > { %718 = vmatpush3.bf16.msra.mxu1 %v827_v11 }
  0x4f   : > { %719 = vmatprep.subr.bf16.mxu1 %v946_v6 }
  0x52   : > { %720 = vmatpush3.bf16.msra.mxu1 %v828_v12 }
  0x53   : > { %721 = vmatprep.subr.bf16.mxu1 %v946_v6 }
  0x56   : > { %722 = vmatpush3.bf16.msra.mxu1 %v829_v13 }
  0x57   : > { %723 = vmatprep.subr.bf16.mxu1 %v946_v6 }
  0x5a   : > { %724 = vmatpush3.bf16.msra.mxu1 %v830_v14 }
  0x5b   : > { %725 = vmatprep.subr.bf16.mxu1 %v946_v6 }
  0x5e   : > { %726 = vmatpush3.bf16.msra.mxu1 %v831_v15 }
  0x5f   : > { %727 = vmatprep.subr.bf16.mxu1 %v946_v6 }
  0x62   : > { %728 = vmatpush3.bf16.msra.mxu1 %v832_v16 }
 0x11e   : > { %v410_v18 = vpop.f32.mrb[0].mxu0 }
 0x11f   : > { %v411_v19 = vadd.f32 %v675_v17, %v410_v18  ;;  %v711_v20 = vpop.f32.mrb[1].mxu0 }
 0x120   : > { %v413_v21 = vpop.f32.mrb[2].mxu0 }
 0x121   : > { %v416_v22 = vmax.f32 %v411_v19, 0.0  ;;  %v712_v23 = vpop.f32.mrb[3].mxu0 }
 0x123   : > { %v418_v24 = vpack.c.bf16 %v416_v22, %v416_v22 }
 0x125   : > { %730 = vmatmul.mubr.bf16.vlgmr.msra.gmra.mrb[0].mxu1 %v418_v24 }
 0x1f5   : > { %528 = sbr.rel (%p687_p7) target bundleno = 518 (0x206), region = 89 }
 0x1f8   : > { %v517_v26 = vpop.f32.mrb[0].mxu1 }
 0x1f9   : > { %v523_v27 = vadd.f32 %v517_v26, %v417_v25  ;;  %v731_v28 = vpop.f32.mrb[1].mxu1 }
 0x1fa   : > { %v520_v29 = vpop.f32.mrb[2].mxu1 }
 0x1fb   : > { %524 = vst.msk [vmem:[#allocation2] sm:$0xff] %vm372_vm2, %v523_v27  ;;  %v732_v30 = vpop.f32.mrb[3].mxu1 }
 0x202   : > { %v529_v31 = vld [vmem:[#allocation2] sm:$0xff] }
 0x203   : > { %v537_v33 = vadd.f32 %v688_v32, %v529_v31 }
 0x205   : > { %538 = vst.msk [vmem:[%s327_s14] sm:$0xff] %vm372_vm2, %v537_v33 }
 0x206 PF: > { %s690_s30 = sshll.u32 %s931_s24, 7  ;;  %s553_s12 = sshll.u32 %s327_s14, 4  ;;  %s554_s12 = int_to_ptr.vmem [resolvable:$true] %s553_s12 }
 0x207   : > { %s1132_s23 = scalar_lea.hbm %s1194_s5, %s690_s30  ;;  %s1213_s16 = sand.u32 1, %s911_s19  }
 0x208   : > { %s540_s28 = scalar_lea.sflag [#allocation5], %s1213_s16  ;;  %s833_s7 = scalar_lea.vmem %s554_s12, 128 }
 0x209   : > { %p834_p8 = scmp.ne.s32.totalorder %s554_s12, %s833_s7  ;;  %s948_s8 = smov [#allocation4]  }
 0x20a   : > { %s837_s29 = sshll.u32 %s948_s8, 4  ;;  %s838_s29 = int_to_ptr.vmem [resolvable:$false] %s837_s29 }
 0x20b   : > { %p835_p9 = pnand %p834_p8, %p1058_p10  ;;  %s839_s10 = scalar_lea.vmem %s838_s29, 256 }
 0x20c   : > { %p840_p13 = scmp.lt.s32.totalorder %s554_s12, %s838_s29  ;;  %p841_p0 = scmp.lt.s32.totalorder %s839_s10, %s833_s7 }
 0x20d   : > { %p836_p11 = pneg %p835_p9 }
 0x20e   : > { %p842_p1 = por %p841_p0, %p840_p13 }
 0x210   : > { %p843_p2 = pnand %p842_p1, %p836_p11 }
 0x212   : > { %846 = shalt.err (!%p843_p2)
}
 0x213   : > { %s847_s24 = scalar_lea.hbm %s1132_s23, 128  ;;  %s851_s21 = scalar_lea.hbm %s1194_s5, 256 }
 0x214   : > { %p848_p3 = scmp.ne.s32.totalorder %s1132_s23, %s847_s24  ;;  %p852_p6 = scmp.lt.u32.totalorder %s1132_s23, %s1194_s5 }
 0x215   : > { %p853_p7 = scmp.lt.u32.totalorder %s851_s21, %s847_s24  ;;  %p855_p9 = scmp.lt.u32.totalorder %s847_s24, %s1132_s23 }
 0x216   : > { %p849_p4 = pnand %p848_p3, %p1058_p10 }
 0x217   : > { %p854_p8 = por %p853_p7, %p852_p6 }
 0x218   : > { %p850_p5 = pneg %p849_p4 }
 0x219   : > { %p856_p11 = por %p855_p9, %p854_p8 }
 0x21b   : > { %p857_p13 = pnand %p856_p11, %p850_p5 }
 0x21d   : > { %860 = shalt.err (!%p857_p13)
}
 0x21e   : > { %733 = dma.vmem_to_hbm [thread:$0]  (%p1058_p10), %s554_s12, 128, %s1132_s23, %s540_s28  }
 0x21f PF: > { %p739_p0 = scmp.ge.s32.totalorder %s943_s27, 2  ;;  %s565_s22 = sand.u32 1, %s907_s18  }
 0x220   : > { %s566_s25 = scalar_lea.sflag [#allocation5], %s565_s22 }
 0x221   : > { %p736_p1 = pnand %p739_p0, %p1065_p12 }
 0x223   : > { %902 = dma.done.wait (!%p736_p1), %s566_s25, 128  }
 0x224   : > { %904 = vsyncadd (!%p736_p1), %s566_s25, 4294967168  ;;  %s18_s27 = sadd.s32 1, %s943_s27   ;;  %s1214_s26 = sld [smem:[#allocation13_spill]] }
 0x225   : > { %p15_p2 = scmp.ge.s32.totalorder %s18_s27, 6   ;;  %s1215_s21 = sld [smem:[#allocation7_spill]] }
 0x226   : > { %s1216_s22 = sld [smem:[#allocation12_spill]]  ;;  %s1217_s23 = sld [smem:[#allocation8_spill]] }
 0x227   : > { %s1218_s24 = sld [smem:[#allocation9_spill]]  ;;  %s1219_s25 = sld [smem:[#allocation10_spill]] }
 0x228   : > { %s1220_s13 = sld [smem:[#allocation11_spill]]  ;;  %s1221_s18 = smov %s911_s19 }
 0x229   : > { %s1222_s19 = smov %s915_s20  ;;  %17 = sbr.rel (!%p15_p2) target bundleno = 8 (0x8), region = 138 }
 0x22a   : > { %s1223_s20 = smov %s1214_s26 }
 0x22e   : > { %s1224_s26 = smov %s1220_s13 }
 0x230   :  { %571 = vsyncpa [#allocation5], 1 }
 0x231   :  { %573 = vsyncpa [#allocation5 + $0x1], 1 }

</bundles_post_ra>
